<compile_context>
chip_gen: v7x
topology: tpu7x:2x2x1
jax: 0.10.0
libtpu: 0.0.40
codegen_flags: <defaults>
</compile_context>

<pallas_src>
import functools

import jax
import jax.numpy as jnp
from jax.experimental import pallas as pl
from jax.experimental.pallas import tpu as pltpu


def contract_kernel(x_ref, o_ref, *, gain):
    """One program = one (batch, channel) pair.

    x_ref: (1, 1, H, W) input tile.
    o_ref: (1, s*s, 1, H//s, W//s) output tiles for this channel; dim 1 is
           indexed by (s1*s + s2).
    """
    s = gain
    H, W = x_ref.shape[-2:]
    Hs, Ws = H // s, W // s

    x = x_ref[0, 0].astype(jnp.float32)                       # (H, W)

    # Row-selection matrices  P[s1] : (Hs, H),  P[h2, h] = 1  iff h == s*h2 + s1
    h2_idx = jax.lax.broadcasted_iota(jnp.int32, (Hs, H), 0)
    h_idx = jax.lax.broadcasted_iota(jnp.int32, (Hs, H), 1)
    # Col-selection matrices  Q[s2] : (W, Ws),  Q[w, w2] = 1  iff w == s*w2 + s2
    w_idx = jax.lax.broadcasted_iota(jnp.int32, (W, Ws), 0)
    w2_idx = jax.lax.broadcasted_iota(jnp.int32, (W, Ws), 1)

    ps = [(h_idx == h2_idx * s + s1).astype(jnp.float32) for s1 in range(s)]
    qs = [(w_idx == w2_idx * s + s2).astype(jnp.float32) for s2 in range(s)]

    for s1 in range(s):
        # rows[h2, w] = x[s*h2 + s1, w]
        rows = jnp.dot(ps[s1], x, preferred_element_type=jnp.float32)       # (Hs, W)
        for s2 in range(s):
            # tile[h2, w2] = x[s*h2 + s1, s*w2 + s2]   (exact: one-hot matmul)
            tile = jnp.dot(rows, qs[s2], preferred_element_type=jnp.float32)  # (Hs, Ws)
            o_ref[0, s1 * s + s2, 0, :, :] = tile.astype(o_ref.dtype)


def contract(x, gain=2):
    """x: (N, C, H, W) -> (N, C*gain*gain, H//gain, W//gain)."""
    N, C, H, W = x.shape
    s = gain
    assert H % s == 0 and W % s == 0, "H and W must be divisible by gain"
    Hs, Ws = H // s, W // s

    out5 = pl.pallas_call(
        functools.partial(contract_kernel, gain=s),
        out_shape=jax.ShapeDtypeStruct((N, s * s, C, Hs, Ws), x.dtype),
        grid=(N, C),
        in_specs=[pl.BlockSpec((1, 1, H, W), lambda n, c: (n, c, 0, 0))],
        out_specs=pl.BlockSpec((1, s * s, 1, Hs, Ws),
                               lambda n, c: (n, 0, c, 0, 0)),
        compiler_params=pltpu.CompilerParams(
            dimension_semantics=("parallel", "parallel")),
    )(x)

    # (N, s*s, C, Hs, Ws) -> (N, C*s*s, Hs, Ws) is a free contiguous reshape:
    # channel index = (s1*s + s2)*C + c, exactly matching
    # x.view(N,C,H//s,s,W//s,s).permute(0,3,5,1,2,4).reshape(N,C*s*s,H//s,W//s).
    return out5.reshape(N, C * s * s, Hs, Ws)


def reference(x, gain=2):
    """Pure-JAX mirror of the PyTorch forward."""
    N, C, H, W = x.shape
    s = gain
    x6 = x.reshape(N, C, H // s, s, W // s, s)
    x6 = jnp.transpose(x6, (0, 3, 5, 1, 2, 4))
    return x6.reshape(N, C * s * s, H // s, W // s)


if __name__ == "__main__":
    key = jax.random.PRNGKey(0)
    x = jax.random.normal(key, (2, 4, 16, 16), jnp.float32)   # (N, C, H, W)

    out = contract(x, gain=2)
    out = jax.block_until_ready(out)

    ref = reference(x, gain=2)
    assert out.shape == (2, 4 * 2 * 2, 8, 8), out.shape
    err = float(jnp.max(jnp.abs(out - ref)))
    assert err <= 1e-6, f"max abs err too large: {err}"
    print("KERNEL_OK")
</pallas_src>

<mosaic_0001>
module attributes {stable_mosaic.version = 11 : i64} {
  func.func @contract_kernel(%arg0: i32, %arg1: i32, %arg2: memref<1x1x16x16xf32, #tpu.memory_space<vmem>>, %arg3: memref<1x4x1x8x8xf32, #tpu.memory_space<vmem>>) attributes {dimension_semantics = [#tpu.dimension_semantics<parallel>, #tpu.dimension_semantics<parallel>], iteration_bounds = array<i64: 2, 4>, scalar_prefetch = 0 : i64, scratch_operands = 0 : i64, tpu.core_type = #tpu.core_type<tc>, window_params = [{transform_indices = @transform_0, window_bounds = array<i64: 1, 1, 16, 16>}, {transform_indices = @transform_1, window_bounds = array<i64: 1, 4, 1, 8, 8>}]} {
    %c0 = arith.constant 0 : index
    %c0_0 = arith.constant 0 : index
    %c0_1 = arith.constant 0 : index
    %c0_2 = arith.constant 0 : index
    %0 = vector.load %arg2[%c0, %c0_0, %c0_1, %c0_2] : memref<1x1x16x16xf32, #tpu.memory_space<vmem>>, vector<1x1x16x16xf32>
    %1 = vector.shape_cast %0 : vector<1x1x16x16xf32> to vector<16x16xf32>
    %2 = tpu.iota {dimensions = array<i32: 0>} : vector<8x16xi32>
    %3 = tpu.iota {dimensions = array<i32: 1>} : vector<8x16xi32>
    %4 = tpu.iota {dimensions = array<i32: 0>} : vector<16x8xi32>
    %5 = tpu.iota {dimensions = array<i32: 1>} : vector<16x8xi32>
    %c2_i32 = arith.constant 2 : i32
    %6 = vector.broadcast %c2_i32 : i32 to vector<8x16xi32>
    %7 = arith.muli %2, %6 : vector<8x16xi32>
    %c0_i32 = arith.constant 0 : i32
    %8 = vector.broadcast %c0_i32 : i32 to vector<8x16xi32>
    %9 = arith.addi %7, %8 : vector<8x16xi32>
    %10 = arith.cmpi eq, %3, %9 : vector<8x16xi32>
    %11 = arith.extui %10 : vector<8x16xi1> to vector<8x16xi32>
    %12 = arith.sitofp %11 : vector<8x16xi32> to vector<8x16xf32>
    %c2_i32_3 = arith.constant 2 : i32
    %13 = vector.broadcast %c2_i32_3 : i32 to vector<8x16xi32>
    %14 = arith.muli %2, %13 : vector<8x16xi32>
    %c1_i32 = arith.constant 1 : i32
    %15 = vector.broadcast %c1_i32 : i32 to vector<8x16xi32>
    %16 = arith.addi %14, %15 : vector<8x16xi32>
    %17 = arith.cmpi eq, %3, %16 : vector<8x16xi32>
    %18 = arith.extui %17 : vector<8x16xi1> to vector<8x16xi32>
    %19 = arith.sitofp %18 : vector<8x16xi32> to vector<8x16xf32>
    %c2_i32_4 = arith.constant 2 : i32
    %20 = vector.broadcast %c2_i32_4 : i32 to vector<16x8xi32>
    %21 = arith.muli %5, %20 : vector<16x8xi32>
    %c0_i32_5 = arith.constant 0 : i32
    %22 = vector.broadcast %c0_i32_5 : i32 to vector<16x8xi32>
    %23 = arith.addi %21, %22 : vector<16x8xi32>
    %24 = arith.cmpi eq, %4, %23 : vector<16x8xi32>
    %25 = arith.extui %24 : vector<16x8xi1> to vector<16x8xi32>
    %26 = arith.sitofp %25 : vector<16x8xi32> to vector<16x8xf32>
    %c2_i32_6 = arith.constant 2 : i32
    %27 = vector.broadcast %c2_i32_6 : i32 to vector<16x8xi32>
    %28 = arith.muli %5, %27 : vector<16x8xi32>
    %c1_i32_7 = arith.constant 1 : i32
    %29 = vector.broadcast %c1_i32_7 : i32 to vector<16x8xi32>
    %30 = arith.addi %28, %29 : vector<16x8xi32>
    %31 = arith.cmpi eq, %4, %30 : vector<16x8xi32>
    %32 = arith.extui %31 : vector<16x8xi1> to vector<16x8xi32>
    %33 = arith.sitofp %32 : vector<16x8xi32> to vector<16x8xf32>
    %cst = arith.constant dense<0.000000e+00> : vector<8x16xf32>
    %34 = tpu.matmul %12, %1, %cst {dimension_numbers = #tpu.dot_dimension_numbers<[1], [0], [0], [1], [0, 0, 1, 1], [], []>} : vector<8x16xf32>, vector<16x16xf32>, vector<8x16xf32> -> vector<8x16xf32>
    %cst_8 = arith.constant dense<0.000000e+00> : vector<8x8xf32>
    %35 = tpu.matmul %34, %26, %cst_8 {dimension_numbers = #tpu.dot_dimension_numbers<[1], [0], [0], [1], [0, 0, 1, 1], [], []>} : vector<8x16xf32>, vector<16x8xf32>, vector<8x8xf32> -> vector<8x8xf32>
    %c0_9 = arith.constant 0 : index
    %c0_10 = arith.constant 0 : index
    %c0_11 = arith.constant 0 : index
    %c0_12 = arith.constant 0 : index
    %c0_13 = arith.constant 0 : index
    %36 = vector.load %arg3[%c0_9, %c0_10, %c0_11, %c0_12, %c0_13] : memref<1x4x1x8x8xf32, #tpu.memory_space<vmem>>, vector<1x1x1x8x8xf32>
    %37 = vector.shape_cast %36 : vector<1x1x1x8x8xf32> to vector<8x8xf32>
    %38 = vector.shape_cast %35 : vector<8x8xf32> to vector<1x1x1x8x8xf32>
    tpu.vector_store %arg3[%c0_9, %c0_10, %c0_11, %c0_12, %c0_13], %38 {strides = array<i32>} : memref<1x4x1x8x8xf32, #tpu.memory_space<vmem>>, vector<1x1x1x8x8xf32>,
    %cst_14 = arith.constant dense<0.000000e+00> : vector<8x8xf32>
    %39 = tpu.matmul %34, %33, %cst_14 {dimension_numbers = #tpu.dot_dimension_numbers<[1], [0], [0], [1], [0, 0, 1, 1], [], []>} : vector<8x16xf32>, vector<16x8xf32>, vector<8x8xf32> -> vector<8x8xf32>
    %c0_15 = arith.constant 0 : index
    %c1 = arith.constant 1 : index
    %c0_16 = arith.constant 0 : index
    %c0_17 = arith.constant 0 : index
    %c0_18 = arith.constant 0 : index
    %40 = vector.load %arg3[%c0_15, %c1, %c0_16, %c0_17, %c0_18] : memref<1x4x1x8x8xf32, #tpu.memory_space<vmem>>, vector<1x1x1x8x8xf32>
    %41 = vector.shape_cast %40 : vector<1x1x1x8x8xf32> to vector<8x8xf32>
    %42 = vector.shape_cast %39 : vector<8x8xf32> to vector<1x1x1x8x8xf32>
    tpu.vector_store %arg3[%c0_15, %c1, %c0_16, %c0_17, %c0_18], %42 {strides = array<i32>} : memref<1x4x1x8x8xf32, #tpu.memory_space<vmem>>, vector<1x1x1x8x8xf32>,
    %cst_19 = arith.constant dense<0.000000e+00> : vector<8x16xf32>
    %43 = tpu.matmul %19, %1, %cst_19 {dimension_numbers = #tpu.dot_dimension_numbers<[1], [0], [0], [1], [0, 0, 1, 1], [], []>} : vector<8x16xf32>, vector<16x16xf32>, vector<8x16xf32> -> vector<8x16xf32>
    %cst_20 = arith.constant dense<0.000000e+00> : vector<8x8xf32>
    %44 = tpu.matmul %43, %26, %cst_20 {dimension_numbers = #tpu.dot_dimension_numbers<[1], [0], [0], [1], [0, 0, 1, 1], [], []>} : vector<8x16xf32>, vector<16x8xf32>, vector<8x8xf32> -> vector<8x8xf32>
    %c0_21 = arith.constant 0 : index
    %c2 = arith.constant 2 : index
    %c0_22 = arith.constant 0 : index
    %c0_23 = arith.constant 0 : index
    %c0_24 = arith.constant 0 : index
    %45 = vector.load %arg3[%c0_21, %c2, %c0_22, %c0_23, %c0_24] : memref<1x4x1x8x8xf32, #tpu.memory_space<vmem>>, vector<1x1x1x8x8xf32>
    %46 = vector.shape_cast %45 : vector<1x1x1x8x8xf32> to vector<8x8xf32>
    %47 = vector.shape_cast %44 : vector<8x8xf32> to vector<1x1x1x8x8xf32>
    tpu.vector_store %arg3[%c0_21, %c2, %c0_22, %c0_23, %c0_24], %47 {strides = array<i32>} : memref<1x4x1x8x8xf32, #tpu.memory_space<vmem>>, vector<1x1x1x8x8xf32>,
    %cst_25 = arith.constant dense<0.000000e+00> : vector<8x8xf32>
    %48 = tpu.matmul %43, %33, %cst_25 {dimension_numbers = #tpu.dot_dimension_numbers<[1], [0], [0], [1], [0, 0, 1, 1], [], []>} : vector<8x16xf32>, vector<16x8xf32>, vector<8x8xf32> -> vector<8x8xf32>
    %c0_26 = arith.constant 0 : index
    %c3 = arith.constant 3 : index
    %c0_27 = arith.constant 0 : index
    %c0_28 = arith.constant 0 : index
    %c0_29 = arith.constant 0 : index
    %49 = vector.load %arg3[%c0_26, %c3, %c0_27, %c0_28, %c0_29] : memref<1x4x1x8x8xf32, #tpu.memory_space<vmem>>, vector<1x1x1x8x8xf32>
    %50 = vector.shape_cast %49 : vector<1x1x1x8x8xf32> to vector<8x8xf32>
    %51 = vector.shape_cast %48 : vector<8x8xf32> to vector<1x1x1x8x8xf32>
    tpu.vector_store %arg3[%c0_26, %c3, %c0_27, %c0_28, %c0_29], %51 {strides = array<i32>} : memref<1x4x1x8x8xf32, #tpu.memory_space<vmem>>, vector<1x1x1x8x8xf32>,
    return
  }
  func.func @transform_0(%arg0: i32, %arg1: i32) -> (i32, i32, i32, i32) {
    %c0_i32 = arith.constant 0 : i32
    %c0_i32_0 = arith.constant 0 : i32
    %c0_i32_1 = arith.constant 0 : i32
    return %arg0, %arg1, %c0_i32, %c0_i32_0 : i32, i32, i32, i32
  }
  func.func @transform_1(%arg0: i32, %arg1: i32) -> (i32, i32, i32, i32, i32) {
    %c0_i32 = arith.constant 0 : i32
    %c0_i32_0 = arith.constant 0 : i32
    %c0_i32_1 = arith.constant 0 : i32
    %c0_i32_2 = arith.constant 0 : i32
    return %arg0, %c0_i32, %arg1, %c0_i32_0, %c0_i32_1 : i32, i32, i32, i32, i32
  }
}

</mosaic_0001>

<bundles_post_ra>
// kernel: tpu_custom_call.1
= control target key start
LH: loop header
LB: loop body
LE: loop exit
PB: predicated region body
PF: predicated region fallthrough
CT: control target
= control target key end

     0   :  { %6 = vsyncpa [#allocation3], 0  ;;  %s1310_s0 = inlined_call_operand.hbm [shape: f32[2,4,16,16], index: 0, kind: input, shape index: {}]   ;;  %s1311_s1 = inlined_call_operand.hbm [shape: f32[2,4,4,8,8], index: 1, kind: output, shape index: {}]  }
   0x1   :  { %8 = vsyncpa [#allocation3 + $0x1], 0 }
   0x2   :  { %9 = vsyncpa [#allocation4], 0 }
   0x3   :  { %11 = vsyncpa [#allocation4 + $0x1], 0  ;;  %s1082_s6 = smov 0   ;;  %s1084_s7 = smov 0  }
   0x4   :  { %s1086_s8 = smov 0   ;;  %s1088_s9 = smov 0  }
   0x5   :  { %s1090_s10 = smov 0   ;;  %s1092_s11 = smov 0  }
   0x6   :  { %s1094_s12 = smov 0   ;;  %s1096_s13 = smov 0  }
   0x7 LB: > { %s727_s14 = sadd.s32 4294967295, %s1059_s13   ;;  %s728_s15 = sadd.s32 4294967294, %s1059_s13   ;;  %s1059_s13 = sphi %s1096_s13, %s17_s13   ;;  %s1055_s12 = sphi %s1094_s12, %s1330_s12   ;;  %s1051_s11 = sphi %s1092_s11, %s1329_s11   ;;  %s1047_s10 = sphi %s1090_s10, %s1328_s10   ;;  %s1043_s9 = sphi %s1088_s9, %s1327_s9   ;;  %s1039_s8 = sphi %s1086_s8, %s1326_s8   ;;  %s1035_s7 = sphi %s1084_s7, %s1325_s7   ;;  %s1031_s6 = sphi %s1082_s6, %s1324_s6  }
   0x8   : > { %s26_s16 = sadd.s32 1, %s1051_s11  ;;  %s29_s17 = sadd.s32 1, %s1055_s12 }
   0x9   : > { %p27_p0 = scmp.ge.s32.totalorder %s26_s16, 4  ;;  %s38_s18 = sadd.s32 1, %s1039_s8 }
   0xa   : > { %p45_p1 = scmp.ne.s32.totalorder %s1039_s8, %s1035_s7  ;;  %p46_p2 = scmp.eq.s32.totalorder %s1059_s13, 0 }
   0xb   : > { %s1332_s16 = smov (%p27_p0, %s26_s16), 0  ;;  %s1334_s17 = smov (!%p27_p0, %s29_s17), %s1055_s12 }
   0xc   : > { %s34_s19 = ssub.s32 %s1051_s11, %s1332_s16  ;;  %p1135_p3 = por %p46_p2, %p45_p1 }
   0xd   : > { %p31_p4 = scmp.ge.s32.totalorder %s1334_s17, 2  ;;  %p51_p5 = scmp.ne.s32.totalorder %s1035_s7, %s1031_s6 }
   0xe   : > { %p52_p6 = scmp.eq.s32.totalorder %s727_s14, 0  ;;  %p77_p7 = scmp.eq.s32.totalorder %s727_s14, 7 }
   0xf   : > { %s1336_s17 = smov (%p31_p4, %s1334_s17), 0  ;;  %p83_p10 = scmp.eq.s32.totalorder %s728_s15, 7 }
  0x10   : > { %p1143_p8 = por %p52_p6, %p51_p5  ;;  %p1147_p9 = por %p77_p7, %p45_p1 }
  0x11   : > { %s33_s23 = ssub.s32 %s1055_s12, %s1336_s17  ;;  %p1153_p12 = por %p83_p10, %p51_p5 }
  0x12   : > { %s1315_s22 = scalar_select %p1147_p9, 1, 0 }
  0x13   : > { %s35_s24 = sor.u32 %s34_s19, %s33_s23  ;;  %p856_p13 = scmp.lt.s32.totalorder %s1059_s13, 8 }
  0x14   : > { %p36_p11 = scmp.eq.s32.totalorder %s35_s24, 0  ;;  %s103_s26 = sand.u32 1, %s1039_s8  }
  0x15   : > { %s1316_s25 = scalar_select %p1153_p12, 1, 0 }
  0x16   : > { %s1160_s27 = scalar_select %p36_p11, %s1039_s8, %s38_s18  }
  0x17   : > { %s731_s28 = sshll.u32 %s103_s26, 4  ;;  %s732_s29 = sshll.u32 %s1051_s11, 1 }
  0x18   : > { %s733_s30 = sshll.u32 %s1055_s12, 3  ;;  %s107_s2 = scalar_lea.vmem [#allocation2], %s731_s28 }
  0x19   : > { %s116_s3 = sshll.u32 %s107_s2, 4  ;;  %s113_s4 = sadd.s32 %s733_s30, %s732_s29  ;;  %s1164_s3 = int_to_ptr.vmem [resolvable:$true] %s116_s3 }
  0x1a   : > { %s734_s5 = sshll.u32 %s113_s4, 7  ;;  %p1168_p0 = pnand %p856_p13, %p1135_p3 }
  0x1b   : > { %s1175_s18 = scalar_lea.hbm %s1310_s0, %s734_s5  ;;  %s1177_s23 = scalar_lea.sflag [#allocation3], %s103_s26 }
  0x1c   : > { %s931_s24 = scalar_lea.hbm %s1175_s18, 256  ;;  %p933_p2 = pneg %p1168_p0 }
  0x1d   : > { %p932_p1 = scmp.ne.s32.totalorder %s1175_s18, %s931_s24  ;;  %s936_s29 = scalar_lea.hbm %s1310_s0, 2048 }
  0x1e   : > { %p937_p5 = scmp.lt.u32.totalorder %s1175_s18, %s1310_s0  ;;  %p938_p6 = scmp.lt.u32.totalorder %s936_s29, %s931_s24 }
  0x1f   : > { %p934_p3 = pnand %p933_p2, %p932_p1  ;;  %p940_p10 = scmp.lt.u32.totalorder %s931_s24, %s1175_s18 }
  0x20   : > { %p939_p7 = por %p938_p6, %p937_p5 }
  0x21   : > { %p935_p4 = pneg %p934_p3 }
  0x22   : > { %p941_p11 = por %p940_p10, %p939_p7 }
  0x24   : > { %p942_p13 = pnand %p941_p11, %p935_p4 }
  0x26   : > { %945 = shalt.err (!%p942_p13)
}
  0x27   : > { %s946_s26 = scalar_lea.vmem %s1164_s3, 256  ;;  %s1061_s4 = smov [#allocation2]  }
  0x28   : > { %p947_p1 = scmp.ne.s32.totalorder %s1164_s3, %s946_s26  ;;  %s951_s5 = sshll.u32 %s1061_s4, 4  ;;  %s952_s5 = int_to_ptr.vmem [resolvable:$false] %s951_s5 }
  0x29   : > { %s953_s15 = scalar_lea.vmem %s952_s5, 512  ;;  %p954_p9 = scmp.lt.s32.totalorder %s1164_s3, %s952_s5 }
  0x2a   : > { %p949_p3 = pnand %p947_p1, %p933_p2  ;;  %p955_p5 = scmp.lt.s32.totalorder %s953_s15, %s946_s26 }
  0x2c   : > { %p950_p12 = pneg %p949_p3  ;;  %p956_p6 = por %p955_p5, %p954_p9 }
  0x2e   : > { %p957_p7 = pnand %p956_p6, %p950_p12 }
  0x30   : > { %960 = shalt.err (!%p957_p7)
}
  0x31   : > { %s1062_s19 = smov 128   ;;  %s1063_s24 = smov 8  }
  0x32   : > { %851 = dma.hbm_to_vmem [thread:$0]  (!%p1168_p0), %s1175_s18, 256, %s1164_s3, %s1177_s23, %s1062_s19, %s1062_s19, %s1063_s24  }
  0x33   : > { %p735_p2 = scmp.ge.s32.totalorder %s1059_s13, 1  ;;  %p124_p4 = scmp.lt.s32.totalorder %s1059_s13, 9 }
  0x35   : > { %p125_p10 = pnand %p735_p2, %p124_p4 }
  0x36   : > { %s1208_s20 = sand.u32 (!%p125_p10), 1, %s1035_s7  }
  0x37   : > { %128 = sbr.rel (%p125_p10) target bundleno = 727 (0x2d7), region = 24  ;;  %s736_s28 = sshll.u32 (!%p125_p10), %s1208_s20, 4 }
  0x38   : > { %s131_s29 = scalar_lea.sflag (!%p125_p10), [#allocation3], %s1208_s20  ;;  %s134_s30 = scalar_lea.vmem (!%p125_p10), [#allocation2], %s736_s28 }
  0x3e   : > { %1022 = dma.done.wait (%p1143_p8), %s131_s29, 256  }
  0x3f   : > { %1024 = vsyncadd (%p1143_p8), %s131_s29, 4294967040  ;;  %v155_v0 = vlaneseq  ;;  %v1064_v1 = vmov 0.0|0.0   ;;  %vm1065_vm0 = vmmov 0   ;;  %v1066_v2 = vmov 0.0   ;;  %v153_v8 = vld [vmem:[%s134_s30] sm:$0xff]  ;;  %v154_v9 = vld [vmem:[%s134_s30 + $0x8] sm:$0xff] }
  0x40   : > { %826 = vmatprep.subr.bf16.mxu0 %v1064_v1  ;;  %788 = vmatprep.mubr.msk.f32.mxu0 %vm1065_vm0, %v1066_v2  ;;  %v827_v12 = vpack.c.bf16 %v154_v9, %v153_v8  ;;  %v1067_v13 = vmov 1.0|1.0   ;;  %vm182_vm7 = vcmask 130048   ;;  %s737_s21 = sshll.u32 %s1208_s20, 5  ;;  %vm329_vm10 = vcmask 64512   ;;  %s762_s14 = sshll.u32 %s1047_s10, 4 }
  0x41   : > { %v156_v3 = vshrl.u32 %v155_v0, 7  ;;  %v158_v4 = vand.u32 127, %v155_v0  ;;  %829 = vmatprep.subr.bf16.mxu1 %v1064_v1  ;;  %795 = vmatprep.mubr.msk.f32.mxu1 %vm1065_vm0, %v1066_v2  ;;  %s152_s3 = scalar_lea.vmem [#allocation5], %s737_s21  ;;  %s635_s18 = sadd.s32 %s1043_s9, %s762_s14 }
  0x42   : > { %828 = vmatpush3.bf16.msra.mxu0 %v827_v12  ;;  %s638_s23 = sshll.u32 %s152_s3, 4  ;;  %s763_s2 = sshll.u32 %s635_s18, 7  ;;  %s1249_s23 = int_to_ptr.vmem [resolvable:$true] %s638_s23 }
  0x43   : > { %v160_v5 = vmul.u32 2, %v156_v3  ;;  %v159_v6 = vadd.s32 8, %v156_v3  ;;  %v168_v7 = vmul.u32 2, %v158_v4  ;;  %832 = vmatprep.subr.bf16.mxu0 %v1064_v1  ;;  %s1254_s5 = scalar_lea.hbm %s1311_s1, %s763_s2  ;;  %s624_s9 = scalar_lea.sflag [#allocation4], %s1208_s20 }
  0x44   : > { %s961_s10 = scalar_lea.vmem %s1249_s23, 512  ;;  %p1322_p9 = scmp.ne.s32.totalorder %s1315_s22, 0 }
  0x45   : > { %vm169_vm1 = vcmp.eq.s32.totalorder %v156_v3, %v168_v7  ;;  %vm170_vm2 = vcmp.eq.s32.totalorder %v159_v6, %v168_v7  ;;  %vm161_vm3 = vcmp.eq.s32.totalorder %v158_v4, %v160_v5  ;;  %v175_v11 = vadd.s32 1, %v168_v7  ;;  %p962_p8 = scmp.ne.s32.totalorder %s1249_s23, %s961_s10  ;;  %s1068_s15 = smov [#allocation5]  }
  0x46   : > { %vm1218_vm4 = vmpackc.low %vm170_vm2, %vm169_vm1  ;;  %v738_v14 = vsel %vm161_vm3, 1.0, %v1066_v2  ;;  %v164_v16 = vadd.s32 1, %v160_v5  ;;  %s965_s19 = sshll.u32 %s1068_s15, 4  ;;  %s966_s19 = int_to_ptr.vmem [resolvable:$false] %s965_s19 }
  0x47   : > { %831 = vmatpush3.bf16.msk.msra.mxu1 %vm1218_vm4, %v1067_v13  ;;  %vm176_vm5 = vcmp.eq.s32.totalorder %v156_v3, %v175_v11  ;;  %vm177_vm6 = vcmp.eq.s32.totalorder %v159_v6, %v175_v11  ;;  %789 = vmatmul.mubr.msk.f32.vlgmr.msra.gmra.mrb[0].mxu0 %vm182_vm7, %v738_v14  ;;  %p963_p12 = pnand %p962_p8, %p1322_p9  ;;  %s967_s24 = scalar_lea.vmem %s966_s19, 1024 }
  0x48   : > { %835 = vmatprep.subr.bf16.mxu1 %v1064_v1  ;;  %vm1224_vm8 = vmpackc.low %vm177_vm6, %vm176_vm5  ;;  %802 = vmatprep.mubr.msk.f32.mxu0 %vm1065_vm0, %v1066_v2  ;;  %vm165_vm9 = vcmp.eq.s32.totalorder %v158_v4, %v164_v16  ;;  %p968_p11 = scmp.lt.s32.totalorder %s1249_s23, %s966_s19  ;;  %p969_p13 = scmp.lt.s32.totalorder %s967_s24, %s961_s10 }
  0x49   : > { %834 = vmatpush3.bf16.msk.msra.mxu0 %vm1224_vm8, %v1067_v13  ;;  %v739_v19 = vsel %vm165_vm9, 1.0, %v1066_v2  ;;  %p964_p0 = pneg %p963_p12 }
  0x4a   : > { %838 = vmatprep.subr.bf16.mxu0 %v1064_v1  ;;  %p970_p1 = por %p969_p13, %p968_p11 }
  0x4c   : > { %p971_p3 = pnand %p970_p1, %p964_p0 }
 0x11a   : > { %v252_v17 = vpop.f32.mrb[0].mxu0 }
 0x11b   : > { %v790_v18 = vpop.f32.mrb[1].mxu0  ;;  %796 = vmatmul.mubr.msk.f32.vlgmr.msra.gmra.mrb[0].mxu1 %vm182_vm7, %v252_v17  ;;  %803 = vmatmul.mubr.msk.f32.vlgmr.msra.gmra.mrb[2].mxu0 %vm182_vm7, %v252_v17 }
 0x11c   : > { %837 = vmatpush3.bf16.msra.mxu1 %v827_v12  ;;  %809 = vmatprep.mubr.msk.f32.mxu1 %vm1065_vm0, %v1066_v2 }
 0x11d   : > { %841 = vmatprep.subr.bf16.mxu1 %v1064_v1  ;;  %840 = vmatpush3.bf16.msk.msra.mxu0 %vm1218_vm4, %v1067_v13 }
 0x11e   : > { %816 = vmatprep.mubr.msk.f32.mxu0 %vm1065_vm0, %v1066_v2 }
 0x11f   : > { %810 = vmatmul.mubr.msk.f32.vlgmr.msra.gmra.mrb[2].mxu1 %vm182_vm7, %v739_v19 }
 0x120   : > { %843 = vmatpush3.bf16.msk.msra.mxu1 %vm1224_vm8, %v1067_v13  ;;  %823 = vmatprep.mubr.msk.f32.mxu1 %vm1065_vm0, %v1066_v2 }
 0x1ee   : > { %v325_v20 = vpop.f32.mrb[0].mxu1  ;;  %v397_v21 = vpop.f32.mrb[2].mxu0 }
 0x1ef   : > { %330 = vst.msk [vmem:[%s152_s3] sm:$0xff] %vm329_vm10, %v325_v20  ;;  %751 = vst.msk [vmem:[%s152_s3 + $0x8] sm:$0xff] %vm329_vm10, %v397_v21  ;;  %v797_v22 = vpop.f32.mrb[1].mxu1  ;;  %v804_v23 = vpop.f32.mrb[3].mxu0 }
 0x1f2   : > { %v472_v24 = vpop.f32.mrb[2].mxu1 }
 0x1f3   : > { %v811_v25 = vpop.f32.mrb[3].mxu1  ;;  %817 = vmatmul.mubr.msk.f32.vlgmr.msra.gmra.mrb[4].mxu0 %vm182_vm7, %v472_v24  ;;  %824 = vmatmul.mubr.msk.f32.vlgmr.msra.gmra.mrb[4].mxu1 %vm182_vm7, %v472_v24 }
 0x2c6   : > { %v545_v26 = vpop.f32.mrb[4].mxu0  ;;  %v617_v27 = vpop.f32.mrb[4].mxu1 }
 0x2c7   : > { %756 = vst.msk [vmem:[%s152_s3 + $0x10] sm:$0xff] %vm329_vm10, %v545_v26  ;;  %760 = vst.msk [vmem:[%s152_s3 + $0x18] sm:$0xff] %vm329_vm10, %v617_v27  ;;  %v818_v28 = vpop.f32.mrb[5].mxu0  ;;  %v825_v29 = vpop.f32.mrb[5].mxu1 }
 0x2c8   : > { %974 = shalt.err (!%p971_p3)
}
 0x2c9   : > { %s975_s28 = scalar_lea.hbm %s1254_s5, 512  ;;  %s979_s21 = scalar_lea.hbm %s1311_s1, 4096 }
 0x2ca   : > { %p976_p5 = scmp.ne.s32.totalorder %s1254_s5, %s975_s28  ;;  %p980_p2 = scmp.lt.u32.totalorder %s1254_s5, %s1311_s1 }
 0x2cb   : > { %p981_p4 = scmp.lt.u32.totalorder %s979_s21, %s975_s28  ;;  %p983_p8 = scmp.lt.u32.totalorder %s975_s28, %s1254_s5 }
 0x2cc   : > { %p977_p6 = pnand %p976_p5, %p1322_p9 }
 0x2cd   : > { %p982_p10 = por %p981_p4, %p980_p2 }
 0x2ce   : > { %p978_p7 = pneg %p977_p6 }
 0x2cf   : > { %p984_p12 = por %p983_p8, %p982_p10 }
 0x2d1   : > { %p985_p0 = pnand %p984_p12, %p978_p7 }
 0x2d3   : > { %988 = shalt.err (!%p985_p0)
}
 0x2d4   : > { %s1069_s18 = smov 128   ;;  %s1070_s2 = smov 512  }
 0x2d5   : > { %s1071_s26 = smov 8  }
 0x2d6   : > { %846 = dma.vmem_to_hbm [thread:$0]  (%p1322_p9), %s1249_s23, 512, %s1254_s5, %s624_s9, %s1069_s18, %s1070_s2, %s1071_s26  }
 0x2d7 PF: > { %p857_p11 = scmp.ge.s32.totalorder %s1059_s13, 2  ;;  %s653_s4 = sand.u32 1, %s1031_s6  }
 0x2d8   : > { %p1323_p13 = scmp.ne.s32.totalorder %s1316_s25, 0  ;;  %s654_s10 = scalar_lea.sflag [#allocation4], %s653_s4 }
 0x2da   : > { %p853_p1 = pnand %p857_p11, %p1323_p13 }
 0x2dc   : > { %1026 = dma.done.wait (!%p853_p1), %s654_s10, 512  }
 0x2dd   : > { %1028 = vsyncadd (!%p853_p1), %s654_s10, 4294966784  ;;  %s17_s13 = sadd.s32 1, %s1059_s13   ;;  %s1324_s6 = smov %s1035_s7 }
 0x2de   : > { %p14_p3 = scmp.ge.s32.totalorder %s17_s13, 10   ;;  %s1325_s7 = smov %s1039_s8 }
 0x2df   : > { %s1326_s8 = smov %s1160_s27  ;;  %s1327_s9 = smov %s1051_s11 }
 0x2e0   : > { %s1328_s10 = smov %s1055_s12  ;;  %s1329_s11 = smov %s1332_s16 }
 0x2e1   : > { %s1330_s12 = smov %s1336_s17  ;;  %16 = sbr.rel (!%p14_p3) target bundleno = 7 (0x7), region = 72 }
 0x2e8   :  { %659 = vsyncpa [#allocation3], 1 }
 0x2e9   :  { %661 = vsyncpa [#allocation3 + $0x1], 1 }
 0x2ea   :  { %662 = vsyncpa [#allocation4], 1 }
 0x2eb   :  { %664 = vsyncpa [#allocation4 + $0x1], 1 }

</bundles_post_ra>
